<compile_context>
chip_gen: v7x
topology: tpu7x:2x2x1
jax: 0.10.0
libtpu: 0.0.40
codegen_flags: <defaults>
</compile_context>

<pallas_src>
import functools

import jax
import jax.numpy as jnp
from jax.experimental import pallas as pl
from jax.experimental.pallas import tpu as pltpu


def _spatial_encoding_kernel(table_ref, sd_ref, out_ref, *, max_len, chunk):
    # table_ref: [H, L+1]  f32  heads-major embedding table (constant block -> fetched once)
    # sd_ref:    [1, S]    i32  flat slab of shortest distances
    # out_ref:   [H, S]    f32  heads-major output slab (lane-dense stores)
    table_t = table_ref[...]                      # [H, L+1], tiny, load once
    num_ids = table_t.shape[1]                    # L+1
    slab = sd_ref.shape[1]

    # Hoisted out of the unrolled loop (JAX does not CSE iota / broadcast_in_dim).
    ids = jax.lax.broadcasted_iota(jnp.int32, (num_ids, chunk), 0)   # [L+1, chunk]

    # Static unroll over modest-width chunks: each dot and its intermediates
    # stay at a friendly vreg count while the grid step stays DMA-sized.
    for j in range(slab // chunk):                                    # slab % chunk == 0
        sl = pl.ds(j * chunk, chunk)                                  # static, 128-aligned
        d = jnp.clip(sd_ref[:, sl], 0, max_len)                       # [1, chunk]
        onehot = (ids == d).astype(jnp.float32)                       # [L+1, chunk]
        # Embedding gather as a tiny-K MXU matmul; exact for a 0/1 one-hot.
        out_ref[:, sl] = jnp.dot(table_t, onehot,
                                 preferred_element_type=jnp.float32)  # [H, chunk]


def _pick_tiles(total, num_heads, *, chunk=2048, target_out_bytes=1 << 20):
    """Pick (slab, chunk): slab = flat elements per grid step, chunk = per-dot width."""
    if total <= chunk:
        # Single full-extent block (always a legal block shape, any size).
        return total, total
    # ~1 MiB of f32 output per grid step keeps the out-DMA well above the
    # ~0.35 us per-step overhead on every TPU generation ...
    slab = max(chunk, (target_out_bytes // (4 * num_heads)) // chunk * chunk)
    # ... but keep >= 2 grid steps so in/out DMAs pipeline and v7x's two
    # TensorCores both get work.
    half_elems = -(-total // 2)                                  # ceil(total / 2)
    half = max(chunk, -(-half_elems // chunk) * chunk)           # round up to chunk
    return min(slab, half), chunk


def spatial_encoding(shortest_distances, embedding_weight, *,
                     max_path_len, num_heads, max_shortest_path_len,
                     heads_major=False):
    """Pallas implementation of SpatialEncoding.forward.

    shortest_distances: int32 [N, N]
    embedding_weight:   float32 [(max_path_len + 1) * num_heads, 1]
    returns:            float32 [N, N, num_heads]   (or [num_heads, N, N] if heads_major)
    """
    n_rows, n_cols = shortest_distances.shape
    total = n_rows * n_cols
    # Python-level min, same as the module (max_shortest_path_len is a plain int).
    max_len = min(max_path_len, int(max_shortest_path_len))

    # weight [(L+1)*H, 1] -> heads-major table [H, L+1] (tiny, pure glue).
    table_t = embedding_weight.reshape(max_path_len + 1, num_heads).T.astype(jnp.float32)
    # Free row-major flatten: [N, N] -> [1, N*N].
    sd_flat = shortest_distances.astype(jnp.int32).reshape(1, total)

    slab, chunk = _pick_tiles(total, num_heads)
    grid = (pl.cdiv(total, slab),)

    # Double-buffered in + out blocks, plus headroom; well inside v7x's 64 MiB VMEM.
    block_bytes = (num_heads + 1) * slab * 4 + num_heads * (max_path_len + 1) * 4
    vmem_limit = int(min(max(3 * block_bytes + (2 << 20), 8 << 20), 32 << 20))

    kernel = functools.partial(_spatial_encoding_kernel, max_len=max_len, chunk=chunk)

    out_flat = pl.pallas_call(
        kernel,
        out_shape=jax.ShapeDtypeStruct((num_heads, total), jnp.float32),
        grid_spec=pltpu.PrefetchScalarGridSpec(
            num_scalar_prefetch=0,
            grid=grid,
            in_specs=[
                # Full table every step (constant block index -> fetched once).
                pl.BlockSpec((num_heads, max_path_len + 1), lambda i: (0, 0)),
                # Flat slab of distances.
                pl.BlockSpec((1, slab), lambda i: (0, i)),
            ],
            # Heads-major, lane-dense output slab.
            out_specs=pl.BlockSpec((num_heads, slab), lambda i: (0, i)),
        ),
        compiler_params=pltpu.CompilerParams(
            dimension_semantics=("parallel",),
            vmem_limit_bytes=vmem_limit),
    )(table_t, sd_flat)

    out_hm = out_flat.reshape(num_heads, n_rows, n_cols)   # free reshape
    if heads_major:
        return out_hm
    # Match the PyTorch module's [N, N, H] layout (layout plumbing outside the kernel).
    return jnp.transpose(out_hm, (1, 2, 0))


def spatial_encoding_ref(shortest_distances, embedding_weight, *,
                         max_path_len, num_heads, max_shortest_path_len):
    """Pure-JAX reference mirroring the PyTorch forward."""
    max_len = min(max_path_len, int(max_shortest_path_len))
    d = jnp.clip(shortest_distances, 0, max_len)
    table = embedding_weight.reshape(max_path_len + 1, num_heads)
    return table[d]  # [N, N, H]


if __name__ == "__main__":
    max_path_len = 5
    num_heads = 8
    max_shortest_path_len = 4   # exercises the min() with self.max_path_len

    key = jax.random.PRNGKey(0)
    k_w, k_d = jax.random.split(key)

    # nn.Embedding default init ~ N(0, 1); weight shape [(L+1)*H, 1].
    embedding_weight = jax.random.normal(
        k_w, ((max_path_len + 1) * num_heads, 1), dtype=jnp.float32)

    # Primary small case + two extras exercising the multi-block grid, the
    # multi-chunk inner loop and a partial (padded) edge block.
    for n_nodes in (16, 181, 256):
        kd = jax.random.fold_in(k_d, n_nodes)
        shortest_distances = jax.random.randint(
            kd, (n_nodes, n_nodes), minval=-1, maxval=10, dtype=jnp.int32)

        out = spatial_encoding(
            shortest_distances, embedding_weight,
            max_path_len=max_path_len, num_heads=num_heads,
            max_shortest_path_len=max_shortest_path_len)
        out = jax.block_until_ready(out)

        ref = spatial_encoding_ref(
            shortest_distances, embedding_weight,
            max_path_len=max_path_len, num_heads=num_heads,
            max_shortest_path_len=max_shortest_path_len)

        assert out.shape == (n_nodes, n_nodes, num_heads), out.shape
        assert jnp.allclose(out, ref, atol=1e-5, rtol=1e-5), \
            f"mismatch vs reference for n_nodes={n_nodes}"

    print("KERNEL_OK")
</pallas_src>

<mosaic_0001>
module attributes {stable_mosaic.version = 11 : i64} {
  func.func @_spatial_encoding_kernel(%arg0: i32, %arg1: memref<8x6xf32, #tpu.memory_space<vmem>>, %arg2: memref<1x256xi32, #tpu.memory_space<vmem>>, %arg3: memref<8x256xf32, #tpu.memory_space<vmem>>) attributes {dimension_semantics = [#tpu.dimension_semantics<parallel>], iteration_bounds = array<i64: 1>, scalar_prefetch = 0 : i64, scratch_operands = 0 : i64, tpu.core_type = #tpu.core_type<tc>, window_params = [{pipeline_mode = #tpu.pipeline_mode<synchronous>, transform_indices = @transform_0, window_bounds = array<i64: 8, 6>}, {transform_indices = @transform_1, window_bounds = array<i64: 1, 256>}, {transform_indices = @transform_2, window_bounds = array<i64: 8, 256>}]} {
    %c0 = arith.constant 0 : index
    %c0_0 = arith.constant 0 : index
    %0 = vector.load %arg1[%c0, %c0_0] : memref<8x6xf32, #tpu.memory_space<vmem>>, vector<8x6xf32>
    %1 = tpu.iota {dimensions = array<i32: 0>} : vector<6x256xi32>
    %c0_1 = arith.constant 0 : index
    %c0_2 = arith.constant 0 : index
    %2 = vector.load %arg2[%c0_1, %c0_2] : memref<1x256xi32, #tpu.memory_space<vmem>>, vector<1x256xi32>
    %c0_i32 = arith.constant 0 : i32
    %c4_i32 = arith.constant 4 : i32
    %3 = vector.broadcast %c0_i32 : i32 to vector<1x256xi32>
    %4 = arith.maxsi %3, %2 : vector<1x256xi32>
    %5 = vector.broadcast %c4_i32 : i32 to vector<1x256xi32>
    %6 = arith.minsi %5, %4 : vector<1x256xi32>
    %7 = vector.broadcast %6 : vector<1x256xi32> to vector<6x256xi32>
    %8 = arith.cmpi eq, %1, %7 : vector<6x256xi32>
    %9 = arith.extui %8 : vector<6x256xi1> to vector<6x256xi32>
    %10 = arith.sitofp %9 : vector<6x256xi32> to vector<6x256xf32>
    %cst = arith.constant dense<0.000000e+00> : vector<8x256xf32>
    %11 = tpu.matmul %0, %10, %cst {dimension_numbers = #tpu.dot_dimension_numbers<[1], [0], [0], [1], [0, 0, 1, 1], [], []>} : vector<8x6xf32>, vector<6x256xf32>, vector<8x256xf32> -> vector<8x256xf32>
    %c0_3 = arith.constant 0 : index
    %c0_4 = arith.constant 0 : index
    %12 = vector.load %arg3[%c0_3, %c0_4] : memref<8x256xf32, #tpu.memory_space<vmem>>, vector<8x256xf32>
    tpu.vector_store %arg3[%c0_3, %c0_4], %11 {strides = array<i32>} : memref<8x256xf32, #tpu.memory_space<vmem>>, vector<8x256xf32>,
    return
  }
  func.func @transform_0(%arg0: i32) -> (i32, i32) {
    %c0_i32 = arith.constant 0 : i32
    %c0_i32_0 = arith.constant 0 : i32
    %c0_i32_1 = arith.constant 0 : i32
    return %c0_i32, %c0_i32_0 : i32, i32
  }
  func.func @transform_1(%arg0: i32) -> (i32, i32) {
    %c0_i32 = arith.constant 0 : i32
    %c0_i32_0 = arith.constant 0 : i32
    return %c0_i32, %arg0 : i32, i32
  }
  func.func @transform_2(%arg0: i32) -> (i32, i32) {
    %c0_i32 = arith.constant 0 : i32
    %c0_i32_0 = arith.constant 0 : i32
    return %c0_i32, %arg0 : i32, i32
  }
}

</mosaic_0001>

<bundles_post_ra>
// kernel: tpu_custom_call.1
= control target key start
LH: loop header
LB: loop body
LE: loop exit
PB: predicated region body
PF: predicated region fallthrough
CT: control target
= control target key end

     0   :  { %7 = vsyncpa [#allocation3], 0  ;;  %s246_s0 = inlined_call_operand.hbm [shape: f32[8,6], index: 0, kind: input, shape index: {}]   ;;  %s247_s1 = inlined_call_operand.vmem [shape: s32[1,256], index: 1, kind: input, shape index: {}]   ;;  %s248_s2 = inlined_call_operand.hbm [shape: f32[8,256], index: 2, kind: output, shape index: {}]  }
   0x1   :  { %8 = vsyncpa [#allocation4], 0  ;;  %s201_s9 = smov [#allocation2]   ;;  %s153_s13 = scalar_lea.hbm %s246_s0, 128 }
   0x2   :  { %s15_s10 = sshll.u32 %s201_s9, 4  ;;  %p154_p0 = scmp.ne.s32.totalorder %s246_s0, %s153_s13  ;;  %s16_s10 = int_to_ptr.vmem [resolvable:$true] %s15_s10 }
   0x3   :  { %p157_p1 = scmp.lt.u32.totalorder %s153_s13, %s246_s0 }
   0x5   :  { %p159_p2 = pnand %p157_p1, %p154_p0 }
   0x7   :  { %162 = shalt.err (!%p159_p2)
}
   0x8   :  { %s163_s18 = scalar_lea.vmem %s16_s10, 128  ;;  %p168_p4 = scmp.lt.s32.totalorder %s16_s10, %s16_s10 }
   0x9   :  { %p164_p3 = scmp.ne.s32.totalorder %s16_s10, %s163_s18  ;;  %p169_p5 = scmp.lt.s32.totalorder %s163_s18, %s163_s18 }
   0xb   :  { %p170_p6 = por %p169_p5, %p168_p4 }
   0xd   :  { %p171_p7 = pnand %p170_p6, %p164_p3 }
   0xf   :  { %174 = shalt.err (!%p171_p7)
}
  0x10   :  { %18 = dma.hbm_to_vmem [thread:$0]  %s246_s0, 128, %s16_s10, [#allocation3]  }
  0x11   :  { %197 = dma.done.wait [#allocation3], 128  }
  0x12   :  { %198 = vsyncadd [#allocation3], 4294967168  ;;  %v25_v0 = vlaneseq  ;;  %v202_v1 = vmov 0.0   ;;  %v27_v3 = vld [vmem:[%s247_s1] sm:$0x3]  ;;  %vm50_vm2 = vcmask 1045504  }
  0x13   :  { %121 = vmatprep.mubr.f32.mxu0 %v202_v1  ;;  %vm28_vm0 = vcmp.gt.s32.totalorder %v27_v3, 0  ;;  %v24_v12 = vld [vmem:[#allocation2] sm:$0xff]  ;;  %vm46_vm5 = vcmask 48128   ;;  %s203_s0 = smov [#allocation5]  }
  0x14   :  { %v26_v2 = vshrl.u32 %v25_v0, 7  ;;  %v29_v6 = vsel %vm28_vm0, %v27_v3, 0  ;;  %s136_s1 = sshll.u32 %s203_s0, 4  ;;  %s137_s1 = int_to_ptr.vmem [resolvable:$true] %s136_s1 }
  0x15   :  { %vm30_vm1 = vcmp.lt.s32.totalorder %v29_v6, 4  ;;  %s175_s23 = scalar_lea.vmem %s137_s1, 256  ;;  %p180_p9 = scmp.lt.s32.totalorder %s137_s1, %s137_s1 }
  0x16   :  { %v38_v4 = vsub.s32 1, %v26_v2  ;;  %v34_v5 = vsub.s32 0, %v26_v2  ;;  %v31_v7 = vsel %vm30_vm1, %v29_v6, 4  ;;  %p176_p8 = scmp.ne.s32.totalorder %s137_s1, %s175_s23  ;;  %p181_p10 = scmp.lt.s32.totalorder %s175_s23, %s175_s23 }
  0x18   :  { %v39_v8 = vrot.slane %v31_v7, %v38_v4  ;;  %v35_v9 = vrot.slane %v31_v7, %v34_v5  ;;  %p182_p11 = por %p181_p10, %p180_p9 }
  0x1a   :  { %vm41_vm3 = vcmp.eq.s32.totalorder %v26_v2, %v39_v8  ;;  %vm40_vm4 = vcmp.eq.s32.totalorder %v26_v2, %v35_v9  ;;  %p183_p12 = pnand %p182_p11, %p176_p8 }
  0x1b   :  { %v146_v10 = vsel %vm41_vm3, 1.0, %v202_v1  ;;  %v145_v11 = vsel %vm40_vm4, 1.0, %v202_v1 }
  0x1c   :  { %147 = vmatprep.subr.msk.mxu0 %vm50_vm2, %v146_v10 }
  0x1d   :  { %148 = vmatpush1.msk.msra.mxu0 %vm50_vm2, %v145_v11 }
  0x1e   :  { %149 = vmatmul.mubr.msk.f32.vlgmr.msra.gmra.mrb[0].mxu0 %vm46_vm5, %v24_v12 }
  0xf1   :  { %v123_v13 = vpop.f32.mrb[0].mxu0 }
  0xf2   :  { %128 = vst [vmem:[#allocation5] sm:$0xff] %v123_v13  ;;  %v125_v14 = vpop.f32.mrb[1].mxu0 }
  0xf3   :  { %129 = vst [vmem:[#allocation5 + $0x8] sm:$0xff] %v125_v14 }
  0xf4   :  { %186 = shalt.err (!%p183_p12)
}
  0xf5   :  { %s187_s26 = scalar_lea.hbm %s248_s2, 256 }
  0xf6   :  { %p188_p13 = scmp.ne.s32.totalorder %s248_s2, %s187_s26  ;;  %p191_p0 = scmp.lt.u32.totalorder %s187_s26, %s248_s2 }
  0xf8   :  { %p193_p1 = pnand %p191_p0, %p188_p13 }
  0xfa   :  { %196 = shalt.err (!%p193_p1)
}
  0xfb   :  { %139 = dma.vmem_to_hbm [thread:$0]  %s137_s1, 256, %s248_s2, [#allocation4]  }
  0xfc   :  { %199 = dma.done.wait [#allocation4], 256  }
  0xfd   :  { %200 = vsyncadd [#allocation4], 4294967040 }
  0xfe   :  { %143 = vsyncpa [#allocation3], 1 }
  0xff   :  { %144 = vsyncpa [#allocation4], 1 }

</bundles_post_ra>
